<compile_context>
chip_gen: v7x
topology: tpu7x:2x2x1
jax: 0.10.0
libtpu: 0.0.40
codegen_flags: <defaults>
</compile_context>

<pallas_src>
import jax
import jax.numpy as jnp
from jax import lax
from jax.experimental import pallas as pl
from jax.experimental.pallas import tpu as pltpu

BN_EPS = 1e-5   # nn.BatchNorm1d default eps
LANE = 128
_SMALL_FOOTPRINT_BYTES = 4 * 1024 * 1024   # below this: whole arrays resident
_FEATURE_TILE = 512                        # C tile for the scaled-up grid path


def _round_up(x, m):
    return ((x + m - 1) // m) * m


def _condition_net_kernel(x_ref, w_ref, bnp_ref, out_ref, stats_ref):
    """Fused linear (single MXU dot) -> training-mode BatchNorm -> tanh.

    Per grid step (feature tile TC):
      x_ref     : (B, K)    concatenated activations, matmul dtype (float!)
      w_ref     : (K, TC)   pre-transposed, lane-padded weight tile
      bnp_ref   : (3, TC)   rows = [fc_bias; bn_gamma; bn_beta], float32
      out_ref   : (B, TC)   tanh(BN(x @ W + b))                    (output)
      stats_ref : (2, TC)   rows = [batch_mean; biased batch_var]  (output)
    """
    # Single MXU push, f32 accumulation regardless of operand dtype.
    # NOTE: integer inputs are cast to a float dtype in the wrapper; never feed
    # int operands to the MXU (v7x has no integer systolic path).
    y = jnp.dot(x_ref[...], w_ref[...], preferred_element_type=jnp.float32)

    bias = bnp_ref[0:1, :]
    gamma = bnp_ref[1:2, :]
    beta = bnp_ref[2:3, :]

    # BatchNorm1d (training): biased batch statistics.  The fc bias cancels in
    # (y - mean), so it is only folded into the returned batch mean, never
    # broadcast-added to the (B, TC) tile.
    inv_b = 1.0 / y.shape[0]
    mean = jnp.sum(y, axis=0, keepdims=True) * inv_b                # (1, TC)
    centered = y - mean
    var = jnp.sum(centered * centered, axis=0, keepdims=True) * inv_b
    scale = gamma * lax.rsqrt(var + BN_EPS)                          # (1, TC)
    out_ref[...] = jnp.tanh(centered * scale + beta)

    stats_ref[0:1, :] = mean + bias   # mean of the full linear (incl. bias)
    stats_ref[1:2, :] = var           # biased batch variance


def prepare_condition_net_params(params, matmul_dtype=jnp.float32):
    """One-time parameter preprocessing (NOT on the per-call hot path).

    Builds a single pre-transposed, lane-padded weight slab (input, C_pad) and
    packs bias/gamma/beta into one (3, C_pad) f32 slab.
    matmul_dtype=jnp.bfloat16 halves weight bytes/VMEM on v5e/v6e/v7x alike
    (f32 accumulation is kept); default f32 keeps parity with PyTorch.
    """
    fc_w = jnp.asarray(params["fc_weight"], jnp.float32)    # (cond, input)
    cond_size, input_size = fc_w.shape
    c_pad = _round_up(cond_size, LANE)
    pad_c = c_pad - cond_size

    w_slab = jnp.pad(fc_w.T, ((0, 0), (0, pad_c))).astype(matmul_dtype)

    def _row(v):
        return jnp.pad(jnp.asarray(v, jnp.float32).reshape(1, cond_size),
                       ((0, 0), (0, pad_c)))

    bnp = jnp.concatenate(
        [_row(params["fc_bias"]), _row(params["bn_gamma"]), _row(params["bn_beta"])],
        axis=0)                                              # (3, C_pad) f32

    return {
        "w_slab": w_slab,
        "bnp": bnp,
        "input_size": input_size,
        "cond_size": cond_size,
        "c_pad": c_pad,
        "matmul_dtype": matmul_dtype,
    }


def condition_net_forward(sent_vec, state_rep, slot_states, kb_found, prepared):
    """Fused forward. Returns (cond, batch_mean, batch_var_biased).

    batch_mean / batch_var are returned so a training loop can update BatchNorm
    running statistics (PyTorch uses unbiased variance for running_var:
    var_unbiased = var * B / (B - 1)).
    """
    B = state_rep.shape[0]
    mm_dtype = prepared["matmul_dtype"]

    # Same ordering as the PyTorch forward's concatenation.  Slot states may be
    # >2-D (matches `.view(B, -1)`); kb_found may be integer -> cast to float
    # matmul dtype before it can reach the MXU.
    pieces = [sent_vec, state_rep]
    pieces += [slot_states[k] for k in sorted(slot_states.keys())]
    pieces += [kb_found]
    x_slab = jnp.concatenate(
        [jnp.reshape(p, (B, -1)).astype(mm_dtype) for p in pieces], axis=1)
    assert x_slab.shape[1] == prepared["input_size"], \
        (x_slab.shape, prepared["input_size"])

    k = prepared["input_size"]
    c_pad = prepared["c_pad"]
    cond_size = prepared["cond_size"]

    itemsize = jnp.dtype(mm_dtype).itemsize
    footprint = (B * k * itemsize            # x slab
                 + k * c_pad * itemsize      # weight slab
                 + 3 * c_pad * 4             # bn params
                 + B * c_pad * 4             # out
                 + 2 * c_pad * 4)            # stats

    out_shapes = (jax.ShapeDtypeStruct((B, c_pad), jnp.float32),
                  jax.ShapeDtypeStruct((2, c_pad), jnp.float32))

    if c_pad <= _FEATURE_TILE or footprint <= _SMALL_FOOTPRINT_BYTES:
        # Tiny problem: whole arrays resident in VMEM, no grid scaffolding,
        # one DMA per operand (3 in, 2 out).
        vmem = pl.BlockSpec(memory_space=pltpu.MemorySpace.VMEM)
        out_pad, stats_pad = pl.pallas_call(
            _condition_net_kernel,
            out_shape=out_shapes,
            in_specs=[vmem, vmem, vmem],
            out_specs=(vmem, vmem),
        )(x_slab, prepared["w_slab"], prepared["bnp"])
    else:
        # Scaled-up cond_size: tile the feature axis (BN stats are per-feature
        # independent).  Parallel grid -> megacore sharding; bounded VMEM on
        # v7x (64 MiB, 32 MiB scoped default).
        tc = _FEATURE_TILE
        while c_pad % tc:          # c_pad is a multiple of LANE, so this terminates
            tc -= LANE
        out_pad, stats_pad = pl.pallas_call(
            _condition_net_kernel,
            out_shape=out_shapes,
            grid=(c_pad // tc,),
            in_specs=[pl.BlockSpec((B, k), lambda j: (0, 0)),
                      pl.BlockSpec((k, tc), lambda j: (0, j)),
                      pl.BlockSpec((3, tc), lambda j: (0, j))],
            out_specs=(pl.BlockSpec((B, tc), lambda j: (0, j)),
                       pl.BlockSpec((2, tc), lambda j: (0, j))),
            compiler_params=pltpu.CompilerParams(
                dimension_semantics=("parallel",)),
        )(x_slab, prepared["w_slab"], prepared["bnp"])
        # TODO(synk): very large B would additionally need batch-axis tiling
        # with a two-pass / accumulator-grid batch-stat reduction.

    cond = out_pad[:, :cond_size]
    batch_mean = stats_pad[0, :cond_size]
    batch_var = stats_pad[1, :cond_size]
    # TODO(synk): BatchNorm1d running_mean/running_var momentum EMA is left to
    # the caller (use batch_mean and batch_var * B / (B - 1)).
    return cond, batch_mean, batch_var


def _reference_forward(sent_vec, state_rep, slot_states, kb_found, params):
    """Pure-JAX reference matching the PyTorch forward (training-mode BN)."""
    B = state_rep.shape[0]
    slot_states_rep = jnp.concatenate(
        [jnp.reshape(slot_states[k], (B, -1)) for k in sorted(slot_states.keys())],
        axis=1).astype(jnp.float32)
    inp = jnp.concatenate(
        [sent_vec.astype(jnp.float32), state_rep.astype(jnp.float32),
         slot_states_rep, kb_found.astype(jnp.float32)], axis=1)
    y = inp @ params["fc_weight"].T + params["fc_bias"]
    mean = jnp.mean(y, axis=0, keepdims=True)
    var = jnp.mean((y - mean) ** 2, axis=0, keepdims=True)
    y_hat = (y - mean) / jnp.sqrt(var + BN_EPS)
    out = jnp.tanh(params["bn_gamma"] * y_hat + params["bn_beta"])
    return out, mean[0], var[0]


if __name__ == "__main__":
    # Small shapes consistent with the module.
    batch = 4
    sent_vec_size = 16
    state_tracker_hidden_size = 32
    slot_dims = {"area": 4, "food": 4}          # slot_states_len = 8
    slot_states_len = sum(slot_dims.values())
    kb_found_size = 8
    cond_size = 32
    input_size = (sent_vec_size + state_tracker_hidden_size
                  + slot_states_len + kb_found_size)

    key = jax.random.PRNGKey(0)
    keys = jax.random.split(key, 10)

    bound = 1.0 / jnp.sqrt(input_size)
    params = {
        "fc_weight": jax.random.uniform(keys[0], (cond_size, input_size),
                                        jnp.float32, -bound, bound),
        "fc_bias": jax.random.uniform(keys[1], (cond_size,),
                                      jnp.float32, -bound, bound),
        "bn_gamma": jnp.ones((cond_size,), jnp.float32),
        "bn_beta": jnp.zeros((cond_size,), jnp.float32),
    }

    # Example inputs.
    sent_vec = jax.random.normal(keys[2], (batch, sent_vec_size), jnp.float32)
    state_rep = jax.random.normal(keys[3], (batch, state_tracker_hidden_size),
                                  jnp.float32)
    slot_states = {
        "area": jax.random.normal(keys[4], (batch, slot_dims["area"]), jnp.float32),
        "food": jax.random.normal(keys[5], (batch, slot_dims["food"]), jnp.float32),
    }
    kb_found = (jax.random.uniform(keys[6], (batch, kb_found_size)) > 0.5
                ).astype(jnp.int32)

    # One-time prep: transpose/pad the weight into a single slab, pack BN params.
    # f32 matmul for exact PyTorch parity in this test; bf16 is supported on
    # v5e/v6e/v7x alike when bit parity is not required.
    prepared = prepare_condition_net_params(params, matmul_dtype=jnp.float32)

    cond, batch_mean, batch_var = condition_net_forward(
        sent_vec, state_rep, slot_states, kb_found, prepared)
    cond = jax.block_until_ready(cond)

    ref_out, ref_mean, ref_var = _reference_forward(
        sent_vec, state_rep, slot_states, kb_found, params)

    assert cond.shape == (batch, cond_size)
    assert jnp.allclose(cond, ref_out, atol=1e-5, rtol=1e-5), "output mismatch"
    assert jnp.allclose(batch_mean, ref_mean, atol=1e-5, rtol=1e-5), "mean mismatch"
    assert jnp.allclose(batch_var, ref_var, atol=1e-5, rtol=1e-5), "var mismatch"

    print("KERNEL_OK")
</pallas_src>

<mosaic_0001>
module attributes {stable_mosaic.version = 11 : i64} {
  func.func @_condition_net_kernel(%arg0: memref<4x64xf32, #tpu.memory_space<vmem>>, %arg1: memref<64x128xf32, #tpu.memory_space<vmem>>, %arg2: memref<3x128xf32, #tpu.memory_space<vmem>>, %arg3: memref<4x128xf32, #tpu.memory_space<vmem>>, %arg4: memref<2x128xf32, #tpu.memory_space<vmem>>) attributes {dimension_semantics = [], scalar_prefetch = 0 : i64, scratch_operands = 0 : i64, tpu.core_type = #tpu.core_type<tc>} {
    %c0 = arith.constant 0 : index
    %c0_0 = arith.constant 0 : index
    %0 = vector.load %arg0[%c0, %c0_0] : memref<4x64xf32, #tpu.memory_space<vmem>>, vector<4x64xf32>
    %c0_1 = arith.constant 0 : index
    %c0_2 = arith.constant 0 : index
    %1 = vector.load %arg1[%c0_1, %c0_2] : memref<64x128xf32, #tpu.memory_space<vmem>>, vector<64x128xf32>
    %cst = arith.constant dense<0.000000e+00> : vector<4x128xf32>
    %2 = tpu.matmul %0, %1, %cst {dimension_numbers = #tpu.dot_dimension_numbers<[1], [0], [0], [1], [0, 0, 1, 1], [], []>} : vector<4x64xf32>, vector<64x128xf32>, vector<4x128xf32> -> vector<4x128xf32>
    %c0_3 = arith.constant 0 : index
    %c0_4 = arith.constant 0 : index
    %3 = vector.load %arg2[%c0_3, %c0_4] : memref<3x128xf32, #tpu.memory_space<vmem>>, vector<1x128xf32>
    %c1 = arith.constant 1 : index
    %c0_5 = arith.constant 0 : index
    %4 = vector.load %arg2[%c1, %c0_5] : memref<3x128xf32, #tpu.memory_space<vmem>>, vector<1x128xf32>
    %c2 = arith.constant 2 : index
    %c0_6 = arith.constant 0 : index
    %5 = vector.load %arg2[%c2, %c0_6] : memref<3x128xf32, #tpu.memory_space<vmem>>, vector<1x128xf32>
    %cst_7 = arith.constant dense<0.000000e+00> : vector<128xf32>
    %6 = vector.multi_reduction <add>, %2, %cst_7 [0] : vector<4x128xf32> to vector<128xf32>
    %7 = vector.shape_cast %6 : vector<128xf32> to vector<1x128xf32>
    %cst_8 = arith.constant 2.500000e-01 : f32
    %8 = vector.broadcast %cst_8 : f32 to vector<1x128xf32>
    %9 = arith.mulf %7, %8 : vector<1x128xf32>
    %10 = vector.broadcast %9 : vector<1x128xf32> to vector<4x128xf32>
    %11 = arith.subf %2, %10 : vector<4x128xf32>
    %12 = arith.mulf %11, %11 : vector<4x128xf32>
    %cst_9 = arith.constant dense<0.000000e+00> : vector<128xf32>
    %13 = vector.multi_reduction <add>, %12, %cst_9 [0] : vector<4x128xf32> to vector<128xf32>
    %14 = vector.shape_cast %13 : vector<128xf32> to vector<1x128xf32>
    %cst_10 = arith.constant 2.500000e-01 : f32
    %15 = vector.broadcast %cst_10 : f32 to vector<1x128xf32>
    %16 = arith.mulf %14, %15 : vector<1x128xf32>
    %cst_11 = arith.constant 9.99999974E-6 : f32
    %17 = vector.broadcast %cst_11 : f32 to vector<1x128xf32>
    %18 = arith.addf %16, %17 : vector<1x128xf32>
    %19 = math.rsqrt %18 : vector<1x128xf32>
    %20 = arith.mulf %4, %19 : vector<1x128xf32>
    %21 = vector.broadcast %20 : vector<1x128xf32> to vector<4x128xf32>
    %22 = arith.mulf %11, %21 : vector<4x128xf32>
    %23 = vector.broadcast %5 : vector<1x128xf32> to vector<4x128xf32>
    %24 = arith.addf %22, %23 : vector<4x128xf32>
    %25 = math.tanh %24 : vector<4x128xf32>
    %c0_12 = arith.constant 0 : index
    %c0_13 = arith.constant 0 : index
    %26 = vector.load %arg3[%c0_12, %c0_13] : memref<4x128xf32, #tpu.memory_space<vmem>>, vector<4x128xf32>
    tpu.vector_store %arg3[%c0_12, %c0_13], %25 {strides = array<i32>} : memref<4x128xf32, #tpu.memory_space<vmem>>, vector<4x128xf32>,
    %27 = arith.addf %9, %3 : vector<1x128xf32>
    %c0_14 = arith.constant 0 : index
    %c0_15 = arith.constant 0 : index
    %28 = vector.load %arg4[%c0_14, %c0_15] : memref<2x128xf32, #tpu.memory_space<vmem>>, vector<1x128xf32>
    tpu.vector_store %arg4[%c0_14, %c0_15], %27 {strides = array<i32>} : memref<2x128xf32, #tpu.memory_space<vmem>>, vector<1x128xf32>,
    %c1_16 = arith.constant 1 : index
    %c0_17 = arith.constant 0 : index
    %29 = vector.load %arg4[%c1_16, %c0_17] : memref<2x128xf32, #tpu.memory_space<vmem>>, vector<1x128xf32>
    tpu.vector_store %arg4[%c1_16, %c0_17], %16 {strides = array<i32>} : memref<2x128xf32, #tpu.memory_space<vmem>>, vector<1x128xf32>,
    return
  }
}

</mosaic_0001>

<bundles_post_ra>
// kernel: tpu_custom_call.1
= control target key start
LH: loop header
LB: loop body
LE: loop exit
PB: predicated region body
PF: predicated region fallthrough
CT: control target
= control target key end

     0   :  { %10 = vsyncpa [#allocation3], 0  ;;  %s448_s0 = inlined_call_operand.hbm [shape: f32[4,64], index: 0, kind: input, shape index: {}]   ;;  %s449_s1 = inlined_call_operand.hbm [shape: f32[64,128], index: 1, kind: input, shape index: {}]   ;;  %s450_s2 = inlined_call_operand.vmem [shape: f32[3,128], index: 2, kind: input, shape index: {}]   ;;  %s451_s3 = inlined_call_operand.hbm [shape: f32[4,128], index: 3, kind: output, shape index: {0}]   ;;  %s452_s4 = inlined_call_operand.hbm [shape: f32[2,128], index: 4, kind: output, shape index: {1}]  }
   0x1   :  { %11 = vsyncpa [#allocation6], 0 }
   0x2   :  { %12 = vsyncpa [#allocation4], 0 }
   0x3   :  { %13 = vsyncpa [#allocation9], 0  ;;  %s348_s15 = smov [#allocation2]   ;;  %s349_s17 = smov [#allocation5]  }
   0x4   :  { %s20_s16 = sshll.u32 %s348_s15, 4  ;;  %s29_s18 = sshll.u32 %s349_s17, 4  ;;  %s21_s16 = int_to_ptr.vmem [resolvable:$true] %s20_s16  ;;  %s382_s18 = int_to_ptr.vmem [resolvable:$true] %s29_s18 }
   0x5   :  { %s252_s21 = scalar_lea.hbm %s448_s0, 64 }
   0x6   :  { %p253_p0 = scmp.ne.s32.totalorder %s448_s0, %s252_s21  ;;  %p256_p1 = scmp.lt.u32.totalorder %s252_s21, %s448_s0 }
   0x8   :  { %p258_p2 = pnand %p256_p1, %p253_p0 }
   0xa   :  { %261 = shalt.err (!%p258_p2)
}
   0xb   :  { %s262_s26 = scalar_lea.vmem %s21_s16, 64  ;;  %p267_p4 = scmp.lt.s32.totalorder %s21_s16, %s21_s16 }
   0xc   :  { %p263_p3 = scmp.ne.s32.totalorder %s21_s16, %s262_s26  ;;  %p268_p5 = scmp.lt.s32.totalorder %s262_s26, %s262_s26 }
   0xe   :  { %p269_p6 = por %p268_p5, %p267_p4 }
  0x10   :  { %p270_p7 = pnand %p269_p6, %p263_p3 }
  0x12   :  { %273 = shalt.err (!%p270_p7)
}
  0x13   :  { %23 = dma.hbm_to_vmem [thread:$0]  %s448_s0, 64, %s21_s16, [#allocation3]  }
  0x14   :  { %s274_s5 = scalar_lea.hbm %s449_s1, 1024 }
  0x15   :  { %p275_p8 = scmp.ne.s32.totalorder %s449_s1, %s274_s5  ;;  %p278_p9 = scmp.lt.u32.totalorder %s274_s5, %s449_s1 }
  0x17   :  { %p280_p10 = pnand %p278_p9, %p275_p8 }
  0x19   :  { %283 = shalt.err (!%p280_p10)
}
  0x1a   :  { %s284_s10 = scalar_lea.vmem %s382_s18, 1024  ;;  %p289_p12 = scmp.lt.s32.totalorder %s382_s18, %s382_s18 }
  0x1b   :  { %p285_p11 = scmp.ne.s32.totalorder %s382_s18, %s284_s10  ;;  %p290_p13 = scmp.lt.s32.totalorder %s284_s10, %s284_s10 }
  0x1d   :  { %p291_p0 = por %p290_p13, %p289_p12 }
  0x1f   :  { %p292_p1 = pnand %p291_p0, %p285_p11 }
  0x21   :  { %295 = shalt.err (!%p292_p1)
}
  0x22   :  { %s350_s0 = smov 128   ;;  %s351_s11 = smov 8  }
  0x23   :  { %35 = dma.hbm_to_vmem [thread:$0]  %s449_s1, 1024, %s382_s18, [#allocation6], %s350_s0, %s350_s0, %s351_s11  }
  0x24   :  { %340 = dma.done.wait [#allocation3], 64  }
  0x25   :  { %341 = vsyncadd [#allocation3], 4294967232 }
  0x26   :  { %342 = dma.done.wait [#allocation6], 1024  }
  0x27   :  { %343 = vsyncadd [#allocation6], 4294966272  ;;  %v352_v0 = vmov 0.0|0.0   ;;  %vm353_vm0 = vmmov 0   ;;  %v354_v1 = vmov 0.0   ;;  %v45_v2 = vld [vmem:[#allocation5] sm:$0xff] }
  0x28   :  { %227 = vmatprep.subr.bf16.mxu0 %v352_v0  ;;  %224 = vmatprep.mubr.msk.f32.mxu0 %vm353_vm0, %v354_v1  ;;  %v46_v3 = vld [vmem:[#allocation5 + $0x8] sm:$0xff]  ;;  %v47_v4 = vld [vmem:[#allocation5 + $0x10] sm:$0xff]  ;;  %v48_v6 = vld [vmem:[#allocation5 + $0x18] sm:$0xff]  ;;  %vm53_vm1 = vcmask 523264   ;;  %vm130_vm2 = vcmask 1043456   ;;  %s355_s15 = smov [#allocation8]  }
  0x29   :  { %v228_v5 = vpack.c.bf16 %v46_v3, %v45_v2  ;;  %v231_v7 = vpack.c.bf16 %v48_v6, %v47_v4  ;;  %v49_v8 = vld [vmem:[#allocation5 + $0x20] sm:$0xff]  ;;  %v50_v9 = vld [vmem:[#allocation5 + $0x28] sm:$0xff]  ;;  %v51_v11 = vld [vmem:[#allocation5 + $0x30] sm:$0xff]  ;;  %s183_s16 = sshll.u32 %s355_s15, 4  ;;  %s184_s16 = int_to_ptr.vmem [resolvable:$true] %s183_s16 }
  0x2a   :  { %v234_v10 = vpack.c.bf16 %v50_v9, %v49_v8  ;;  %v52_v12 = vld [vmem:[#allocation5 + $0x38] sm:$0xff]  ;;  %s296_s17 = scalar_lea.vmem %s184_s16, 32  ;;  %p301_p3 = scmp.lt.s32.totalorder %s184_s16, %s184_s16 }
  0x2b   :  { %229 = vmatpush3.bf16.msra.mxu0 %v228_v5  ;;  %v237_v13 = vpack.c.bf16 %v52_v12, %v51_v11  ;;  %v44_v14 = vld [vmem:[#allocation2] sm:$0xf]  ;;  %p297_p2 = scmp.ne.s32.totalorder %s184_s16, %s296_s17  ;;  %p302_p4 = scmp.lt.s32.totalorder %s296_s17, %s296_s17 }
  0x2c   :  { %230 = vmatprep.subr.bf16.mxu0 %v352_v0  ;;  %v127_v24 = vld [vmem:[%s450_s2] sm:$0x1] }
  0x2d   :  { %p303_p5 = por %p302_p4, %p301_p3 }
  0x2f   :  { %232 = vmatpush3.bf16.msra.mxu0 %v231_v7  ;;  %p304_p6 = pnand %p303_p5, %p297_p2 }
  0x30   :  { %233 = vmatprep.subr.bf16.mxu0 %v352_v0 }
  0x33   :  { %235 = vmatpush3.bf16.msra.mxu0 %v234_v10 }
  0x34   :  { %236 = vmatprep.subr.bf16.mxu0 %v352_v0 }
  0x37   :  { %238 = vmatpush3.bf16.msra.mxu0 %v237_v13 }
  0x3a   :  { %225 = vmatmul.mubr.msk.f32.vlgmr.msra.gmra.mrb[0].mxu0 %vm53_vm1, %v44_v14 }
 0x10d   :  { %v123_v15 = vpop.f32.mrb[0].mxu0 }
 0x10e   :  { %v131_v16 = vsel %vm130_vm2, %v123_v15, 0.0  ;;  %v226_v17 = vpop.f32.mrb[1].mxu0 }
 0x10f   :  { %v132_v18 = vrot.slane %v131_v16, 4 }
 0x111   :  { %v133_v19 = vadd.f32 %v132_v18, %v131_v16 }
 0x113   :  { %v134_v20 = vrot.slane %v133_v19, 2 }
 0x115   :  { %v135_v21 = vadd.f32 %v134_v20, %v133_v19 }
 0x117   :  { %v136_v22 = vrot.slane %v135_v21, 1 }
 0x119   :  { %v137_v23 = vadd.f32 %v136_v22, %v135_v21 }
 0x11b   :  { %v138_v25 = vmul.f32 0.25, %v137_v23 }
 0x11d   :  { %v139_v26 = vsub.f32 %v123_v15, %v138_v25  ;;  %v164_v27 = vadd.f32 %v138_v25, %v127_v24 }
 0x11f   :  { %v140_v28 = vmul.f32 %v139_v26, %v139_v26  ;;  %165 = vst [vmem:[#allocation8] sm:$0x1] %v164_v27 }
 0x121   :  { %v141_v29 = vsel %vm130_vm2, %v140_v28, 0.0 }
 0x122   :  { %v142_v30 = vrot.slane %v141_v29, 4 }
 0x124   :  { %v143_v31 = vadd.f32 %v142_v30, %v141_v29 }
 0x126   :  { %v144_v32 = vrot.slane %v143_v31, 2 }
 0x128   :  { %v145_v33 = vadd.f32 %v144_v32, %v143_v31 }
 0x12a   :  { %v146_v34 = vrot.slane %v145_v33, 1 }
 0x12c   :  { %v147_v35 = vadd.f32 %v146_v34, %v145_v33 }
 0x12e   :  { %v148_v36 = vmul.f32 0.25, %v147_v35 }
 0x130   :  { %v149_v37 = vadd.f32 1e-05, %v148_v36  ;;  %166 = vst [vmem:[#allocation8 + $0x1] sm:$0x1] %v148_v36 }
 0x131   :  { %307 = shalt.err (!%p304_p6)
}
 0x132   :  { %s308_s20 = scalar_lea.hbm %s452_s4, 32 }
 0x133   :  { %p309_p7 = scmp.ne.s32.totalorder %s452_s4, %s308_s20  ;;  %p312_p8 = scmp.lt.u32.totalorder %s308_s20, %s452_s4 }
 0x135   :  { %p314_p9 = pnand %p312_p8, %p309_p7 }
 0x137   :  { %317 = shalt.err (!%p314_p9)
}
 0x138   :  { %186 = dma.vmem_to_hbm [thread:$0]  %s184_s16, 32, %s452_s4, [#allocation9]   ;;  %248 = vrsqrt.f32 %v149_v37  ;;  %v152_v38 = vlaneseq  ;;  %v128_v40 = vld [vmem:[%s450_s2 + $0x1] sm:$0x1]  ;;  %v198_v45 = vld [vmem:[%s450_s2 + $0x2] ss:$0 sm:$0xff] }
 0x139   :  { %s356_s5 = smov [#allocation7]  }
 0x13a   :  { %v153_v39 = vshrl.u32 %v152_v38, 7  ;;  %s173_s4 = sshll.u32 %s356_s5, 4  ;;  %s174_s4 = int_to_ptr.vmem [resolvable:$true] %s173_s4 }
 0x13b   :  { %s318_s6 = scalar_lea.vmem %s174_s4, 64  ;;  %p323_p11 = scmp.lt.s32.totalorder %s174_s4, %s174_s4 }
 0x13c   :  { %v154_v41 = vsub.s32 0, %v153_v39  ;;  %p319_p10 = scmp.ne.s32.totalorder %s174_s4, %s318_s6  ;;  %p324_p12 = scmp.lt.s32.totalorder %s318_s6, %s318_s6 }
 0x13e   :  { %p325_p13 = por %p324_p12, %p323_p11 }
 0x140   :  { %p326_p0 = pnand %p325_p13, %p319_p10 }
 0x142   :  { %v249_v42 = vpop.eup %248 }
 0x143   :  { %v151_v43 = vmul.f32 %v249_v42, %v128_v40 }
 0x145   :  { %v155_v44 = vrot.slane %v151_v43, %v154_v41 }
 0x147   :  { %v156_v46 = vmul.f32 %v155_v44, %v139_v26 }
 0x149   :  { %v161_v47 = vadd.f32 %v198_v45, %v156_v46 }
 0x14b   :  { %250 = vtanh.f32 %v161_v47 }
 0x155   :  { %v251_v48 = vpop.eup %250 }
 0x156   :  { %163 = vst [vmem:[#allocation7] sm:$0xf] %v251_v48 }
 0x157   :  { %329 = shalt.err (!%p326_p0)
}
 0x158   :  { %s330_s9 = scalar_lea.hbm %s451_s3, 64 }
 0x159   :  { %p331_p1 = scmp.ne.s32.totalorder %s451_s3, %s330_s9  ;;  %p334_p2 = scmp.lt.u32.totalorder %s330_s9, %s451_s3 }
 0x15b   :  { %p336_p3 = pnand %p334_p2, %p331_p1 }
 0x15d   :  { %339 = shalt.err (!%p336_p3)
}
 0x15e   :  { %176 = dma.vmem_to_hbm [thread:$0]  %s174_s4, 64, %s451_s3, [#allocation4]  }
 0x15f   :  { %344 = dma.done.wait [#allocation4], 64  }
 0x160   :  { %345 = vsyncadd [#allocation4], 4294967232 }
 0x161   :  { %346 = dma.done.wait [#allocation9], 32  }
 0x162   :  { %347 = vsyncadd [#allocation9], 4294967264 }
 0x163   :  { %193 = vsyncpa [#allocation3], 1 }
 0x164   :  { %194 = vsyncpa [#allocation6], 1 }
 0x165   :  { %195 = vsyncpa [#allocation4], 1 }
 0x166   :  { %196 = vsyncpa [#allocation9], 1 }

</bundles_post_ra>
